<compile_context>
chip_gen: v5e
topology: v5e:2x2
jax: 0.10.0
libtpu: 0.0.40
codegen_flags: <defaults>
</compile_context>

<pallas_src>
import functools

import jax
import jax.numpy as jnp
from jax import lax
from jax.experimental import pallas as pl
from jax.experimental.pallas import tpu as pltpu

LN_EPS = 1e-5  # PyTorch nn.LayerNorm default


def _gelu_tanh(x):
    # TODO(synk): PyTorch F.gelu defaults to the exact erf-based GELU; the
    # tanh approximation is used here for a guaranteed Mosaic lowering
    # (max abs deviation ~3e-3).
    c = 0.7978845608028654  # sqrt(2/pi)
    return 0.5 * x * (1.0 + jnp.tanh(c * (x + 0.044715 * (x * x * x))))


# ------------------------------ fused kernel -------------------------------


def _layer_kernel(x_ref, ctx_ref,
                  lnq_g_ref, lnq_b_ref, lnc_g_ref, lnc_b_ref,
                  wq_ref, wkv_ref, wo_ref, bo_ref,
                  lnf_g_ref, lnf_b_ref,
                  w1v_ref, b1v_ref, w1g_ref, b1g_ref, w2_ref, b2_ref,
                  o_ref,
                  kv_scr, attn_scr,
                  *, nhead, compute_dtype):
    D = x_ref.shape[-1]
    Dh = D // nhead
    cdt = compute_dtype

    def layernorm(v, g_ref, b_ref):       # f32 statistics (safe on v5e too)
        mu = jnp.mean(v, axis=-1, keepdims=True)
        vc = v - mu
        var = jnp.mean(vc * vc, axis=-1, keepdims=True)
        return vc * lax.rsqrt(var + LN_EPS) * g_ref[...] + b_ref[...]

    # ---- per-batch KV projection: compute once (first Tq tile), reuse ----
    @pl.when(pl.program_id(1) == 0)
    def _():
        cn = layernorm(ctx_ref[0].astype(jnp.float32), lnc_g_ref, lnc_b_ref)
        kv = jnp.dot(cn.astype(cdt), wkv_ref[...],
                     preferred_element_type=jnp.float32)          # [Tc, 2D]
        kv_scr[...] = kv.astype(cdt)

    # ---------------- cross-attention block (PreNorm) ----------------
    x = x_ref[0].astype(jnp.float32)                              # [tq, D]
    xn = layernorm(x, lnq_g_ref, lnq_b_ref)   # normed queries (residual base)

    # 1/sqrt(Dh) is folded into Wq on the host side.
    q = jnp.dot(xn.astype(cdt), wq_ref[...],
                preferred_element_type=jnp.float32).astype(cdt)   # [tq, D]
    k = kv_scr[:, :D]                                             # bf16 [Tc, D]
    v = kv_scr[:, D:]                                             # bf16 [Tc, D]

    # TODO(synk): when Dh < 128 at production sizes, restructure this static
    # per-head loop into a head-batched dot_general to avoid sub-tile slices.
    for h in range(nhead):
        sl = slice(h * Dh, (h + 1) * Dh)
        qh, kh, vh = q[:, sl], k[:, sl], v[:, sl]                 # bf16 tiles
        # contract last dims on both operands -> no transposed copy of kh
        s = lax.dot_general(qh, kh, (((1,), (1,)), ((), ())),
                            preferred_element_type=jnp.float32)   # [tq, Tc]
        m = jnp.max(s, axis=-1, keepdims=True)
        p = jnp.exp(s - m)
        p = p * pl.reciprocal(jnp.sum(p, axis=-1, keepdims=True), approx=True)
        attn_scr[:, sl] = jnp.dot(p.astype(cdt), vh,
                                  preferred_element_type=jnp.float32)

    attn = jnp.dot(attn_scr[...].astype(cdt), wo_ref[...],
                   preferred_element_type=jnp.float32) + bo_ref[...]
    h1 = xn + attn                         # PreNorm residual adds the NORMED x

    # ---------------- feed-forward block (PreNorm + split GEGLU) -----------
    hn = layernorm(h1, lnf_g_ref, lnf_b_ref)
    hn_c = hn.astype(cdt)
    gate = jnp.dot(hn_c, w1g_ref[...],
                   preferred_element_type=jnp.float32) + b1g_ref[...]  # [tq,FF]
    val = jnp.dot(hn_c, w1v_ref[...],
                  preferred_element_type=jnp.float32) + b1v_ref[...]   # [tq,FF]
    ff = val * _gelu_tanh(gate)                                        # GEGLU
    ff = jnp.dot(ff.astype(cdt), w2_ref[...],
                 preferred_element_type=jnp.float32) + b2_ref[...]     # [tq,D]

    o_ref[0] = (hn + ff).astype(o_ref.dtype)   # PreNorm residual adds NORMED h


# ------------------------------ host wrapper -------------------------------


def _pick_tq_tile(T, pref=256):
    """Largest divisor of T that is <= pref and tile-friendly (mult of 8)."""
    if T <= pref:
        return T
    for cand in range(pref, 7, -1):
        if T % cand == 0 and cand % 8 == 0:
            return cand
    return T


def lbanp_causal_decoder_layer(params, query_encodings, context, nhead,
                               rollout=False, compute_dtype=jnp.bfloat16,
                               tq_tile=256):
    """Fused forward of LBANPCausalDecoderLayer (norm_first=True, dropout=0).

    `rollout` is accepted for API parity; as in the PyTorch forward it does
    not change the dense math, so it is ignored.
    """
    del rollout
    B, Tq, D = query_encodings.shape
    Bc, Tc, Dc = context.shape
    assert Bc == B and Dc == D and D % nhead == 0

    cdt = compute_dtype
    FF = params["w2"].shape[0]
    Dh = D // nhead

    tq_tile = _pick_tq_tile(Tq, tq_tile)
    n_tq = Tq // tq_tile

    row = lambda a: a.reshape(1, -1).astype(jnp.float32)   # biases / LN params

    # Fold the attention scale into Wq (saves nhead*Tq*Tc VPU multiplies).
    wq = (params["wq"] * (Dh ** -0.5)).astype(cdt)
    # Split the GEGLU projection into value / gate halves.
    w1, b1 = params["w1"], params["b1"]
    w1v, w1g = w1[:, :FF].astype(cdt), w1[:, FF:].astype(cdt)
    b1v, b1g = row(b1[:FF]), row(b1[FF:])

    args = [
        query_encodings, context,
        row(params["ln_q_g"]), row(params["ln_q_b"]),
        row(params["ln_c_g"]), row(params["ln_c_b"]),
        wq, params["wkv"].astype(cdt), params["wo"].astype(cdt),
        row(params["bo"]),
        row(params["ln_f_g"]), row(params["ln_f_b"]),
        w1v, b1v, w1g, b1g,
        params["w2"].astype(cdt), row(params["b2"]),
    ]
    # Indices (into `args`) of the big weight matrices: constant across the
    # grid -> single-buffer them so VMEM residency is not doubled (v7x).
    single_buffer = {6, 7, 8, 12, 14, 16}   # wq, wkv, wo, w1v, w1g, w2

    x_spec = pl.BlockSpec((1, tq_tile, D), lambda b, t: (b, t, 0))
    ctx_spec = pl.BlockSpec((1, Tc, D), lambda b, t: (b, 0, 0))
    out_spec = pl.BlockSpec((1, tq_tile, D), lambda b, t: (b, t, 0))

    def const_spec(a, single):
        zeros = (0,) * a.ndim
        return pl.BlockSpec(
            a.shape, lambda b, t, _z=zeros: _z,
            pipeline_mode=pl.Buffered(1) if single else None)

    in_specs = [x_spec, ctx_spec] + [
        const_spec(a, i in single_buffer)
        for i, a in enumerate(args) if i >= 2
    ]

    scratch_shapes = [
        pltpu.VMEM((Tc, 2 * D), cdt),              # cached K|V projection
        pltpu.VMEM((tq_tile, D), jnp.float32),     # per-head attention output
    ]

    # Explicit VMEM budget from the actual buffer sum (+ headroom), capped at
    # the smallest physical VMEM across generations (64 MiB on v7x).
    def _nbytes(a):
        return int(a.size) * jnp.dtype(a.dtype).itemsize
    w_single = sum(_nbytes(args[i]) for i in single_buffer)
    w_double = 2 * sum(_nbytes(args[i]) for i in range(2, len(args))
                       if i not in single_buffer)
    act = 2 * (_nbytes(args[0]) // (B * n_tq) + _nbytes(args[1]) // B
               + tq_tile * D * jnp.dtype(query_encodings.dtype).itemsize)
    scr = Tc * 2 * D * jnp.dtype(cdt).itemsize + tq_tile * D * 4
    need = w_single + w_double + act + scr
    vmem_limit = min(64 << 20, max(32 << 20, int(1.4 * need) + (4 << 20)))

    kernel = functools.partial(_layer_kernel, nhead=nhead, compute_dtype=cdt)

    # TODO(synk): at production sizes (D ~ 1k, FF ~ 4k) add an FF-tiled grid
    # axis for the GEGLU/W2 matmuls so the w1/w2 slabs need not stay whole in
    # VMEM on v7x.
    return pl.pallas_call(
        kernel,
        grid=(B, n_tq),
        in_specs=in_specs,
        out_specs=out_spec,
        out_shape=jax.ShapeDtypeStruct((B, Tq, D), query_encodings.dtype),
        scratch_shapes=scratch_shapes,
        compiler_params=pltpu.CompilerParams(
            dimension_semantics=("parallel", "arbitrary"),
            vmem_limit_bytes=vmem_limit),
    )(*args)


# ----------------------- params / reference / main -------------------------


def init_layer_params(key, d_model, dim_feedforward):
    D, FF = d_model, dim_feedforward
    ks = jax.random.split(key, 14)

    def w(k, shape):
        return jax.random.normal(k, shape, jnp.float32) / jnp.sqrt(
            jnp.float32(shape[0]))

    small = lambda k, n: 0.1 * jax.random.normal(k, (n,), jnp.float32)
    return {
        "ln_q_g": 1.0 + small(ks[0], D), "ln_q_b": small(ks[1], D),
        "ln_c_g": 1.0 + small(ks[2], D), "ln_c_b": small(ks[3], D),
        "wq": w(ks[4], (D, D)),
        "wkv": w(ks[5], (D, 2 * D)),
        "wo": w(ks[6], (D, D)), "bo": small(ks[7], D),
        "ln_f_g": 1.0 + small(ks[8], D), "ln_f_b": small(ks[9], D),
        "w1": w(ks[10], (D, 2 * FF)), "b1": small(ks[11], 2 * FF),
        "w2": w(ks[12], (FF, D)), "b2": small(ks[13], D),
    }


def reference_forward(params, x, context, nhead, weight_dtype=jnp.float32):
    """Pure-JAX reference mirroring the PyTorch module (validation only).

    With weight_dtype=bf16 it emulates the kernel's weight precision while
    keeping f32 activations, for a tighter relative-error check.
    """
    D = x.shape[-1]
    Dh = D // nhead
    FF = params["w2"].shape[0]
    wc = lambda w: w.astype(weight_dtype).astype(jnp.float32)

    def ln(v, g, b):
        mu = jnp.mean(v, axis=-1, keepdims=True)
        var = jnp.mean((v - mu) ** 2, axis=-1, keepdims=True)
        return (v - mu) / jnp.sqrt(var + LN_EPS) * g + b

    xn = ln(x, params["ln_q_g"], params["ln_q_b"])
    cn = ln(context, params["ln_c_g"], params["ln_c_b"])
    q = xn @ wc(params["wq"])
    kv = cn @ wc(params["wkv"])
    k, v = kv[..., :D], kv[..., D:]

    def split(t):
        B, T, _ = t.shape
        return t.reshape(B, T, nhead, Dh).transpose(0, 2, 1, 3)

    qh, kh, vh = split(q), split(k), split(v)
    s = jnp.einsum("bhqd,bhkd->bhqk", qh, kh) * (Dh ** -0.5)
    p = jax.nn.softmax(s, axis=-1)
    o = jnp.einsum("bhqk,bhkd->bhqd", p, vh)
    o = o.transpose(0, 2, 1, 3).reshape(x.shape)
    attn = o @ wc(params["wo"]) + params["bo"]
    h1 = xn + attn
    hn = ln(h1, params["ln_f_g"], params["ln_f_b"])
    ff = hn @ wc(params["w1"]) + params["b1"]
    ff = ff[..., :FF] * _gelu_tanh(ff[..., FF:])
    ff = ff @ wc(params["w2"]) + params["b2"]
    return hn + ff


if __name__ == "__main__":
    B, Tq, Tc = 2, 8, 12
    D, H, FF = 32, 4, 64

    key = jax.random.PRNGKey(0)
    k_q, k_ctx, k_params = jax.random.split(key, 3)
    query_encodings = jax.random.normal(k_q, (B, Tq, D), jnp.float32)
    context = jax.random.normal(k_ctx, (B, Tc, D), jnp.float32)
    params = init_layer_params(k_params, D, FF)

    layer_fwd = jax.jit(functools.partial(lbanp_causal_decoder_layer, nhead=H))
    out = jax.block_until_ready(layer_fwd(params, query_encodings, context))

    assert out.shape == (B, Tq, D) and out.dtype == jnp.float32

    # Relative-error checks: tighter against a matched bf16-weight reference,
    # looser against the exact-f32 reference (bf16 MXU operands, approximate
    # softmax reciprocal, tanh GELU).
    ref_f32 = reference_forward(params, query_encodings, context, H)
    ref_b16 = reference_forward(params, query_encodings, context, H,
                                weight_dtype=jnp.bfloat16)

    def rel_err(a, b):
        return float(jnp.max(jnp.abs(a - b)) / (jnp.max(jnp.abs(b)) + 1e-6))

    assert rel_err(out, ref_b16) < 0.05, f"bf16-ref mismatch: {rel_err(out, ref_b16)}"
    assert rel_err(out, ref_f32) < 0.10, f"f32-ref mismatch: {rel_err(out, ref_f32)}"

    print("KERNEL_OK")
</pallas_src>

<mosaic_0001>
module attributes {stable_mosaic.version = 11 : i64} {
  func.func @_layer_kernel(%arg0: i32, %arg1: i32, %arg2: memref<1x8x32xf32, #tpu.memory_space<vmem>>, %arg3: memref<1x12x32xf32, #tpu.memory_space<vmem>>, %arg4: memref<1x32xf32, #tpu.memory_space<vmem>>, %arg5: memref<1x32xf32, #tpu.memory_space<vmem>>, %arg6: memref<1x32xf32, #tpu.memory_space<vmem>>, %arg7: memref<1x32xf32, #tpu.memory_space<vmem>>, %arg8: memref<32x32xbf16, #tpu.memory_space<vmem>>, %arg9: memref<32x64xbf16, #tpu.memory_space<vmem>>, %arg10: memref<32x32xbf16, #tpu.memory_space<vmem>>, %arg11: memref<1x32xf32, #tpu.memory_space<vmem>>, %arg12: memref<1x32xf32, #tpu.memory_space<vmem>>, %arg13: memref<1x32xf32, #tpu.memory_space<vmem>>, %arg14: memref<32x64xbf16, #tpu.memory_space<vmem>>, %arg15: memref<1x64xf32, #tpu.memory_space<vmem>>, %arg16: memref<32x64xbf16, #tpu.memory_space<vmem>>, %arg17: memref<1x64xf32, #tpu.memory_space<vmem>>, %arg18: memref<64x32xbf16, #tpu.memory_space<vmem>>, %arg19: memref<1x32xf32, #tpu.memory_space<vmem>>, %arg20: memref<1x8x32xf32, #tpu.memory_space<vmem>>, %arg21: memref<12x64xbf16, #tpu.memory_space<vmem>>, %arg22: memref<8x32xf32, #tpu.memory_space<vmem>>) attributes {dimension_semantics = [#tpu.dimension_semantics<parallel>, #tpu.dimension_semantics<arbitrary>], iteration_bounds = array<i64: 2, 1>, scalar_prefetch = 0 : i64, scratch_operands = 2 : i64, tpu.core_type = #tpu.core_type<tc>, window_params = [{transform_indices = @transform_0, window_bounds = array<i64: 1, 8, 32>}, {transform_indices = @transform_1, window_bounds = array<i64: 1, 12, 32>}, {pipeline_mode = #tpu.pipeline_mode<synchronous>, transform_indices = @transform_2, window_bounds = array<i64: 1, 32>}, {pipeline_mode = #tpu.pipeline_mode<synchronous>, transform_indices = @transform_3, window_bounds = array<i64: 1, 32>}, {pipeline_mode = #tpu.pipeline_mode<synchronous>, transform_indices = @transform_4, window_bounds = array<i64: 1, 32>}, {pipeline_mode = #tpu.pipeline_mode<synchronous>, transform_indices = @transform_5, window_bounds = array<i64: 1, 32>}, {pipeline_mode = #tpu.pipeline_mode<synchronous>, transform_indices = @transform_6, window_bounds = array<i64: 32, 32>}, {pipeline_mode = #tpu.pipeline_mode<synchronous>, transform_indices = @transform_7, window_bounds = array<i64: 32, 64>}, {pipeline_mode = #tpu.pipeline_mode<synchronous>, transform_indices = @transform_8, window_bounds = array<i64: 32, 32>}, {pipeline_mode = #tpu.pipeline_mode<synchronous>, transform_indices = @transform_9, window_bounds = array<i64: 1, 32>}, {pipeline_mode = #tpu.pipeline_mode<synchronous>, transform_indices = @transform_10, window_bounds = array<i64: 1, 32>}, {pipeline_mode = #tpu.pipeline_mode<synchronous>, transform_indices = @transform_11, window_bounds = array<i64: 1, 32>}, {pipeline_mode = #tpu.pipeline_mode<synchronous>, transform_indices = @transform_12, window_bounds = array<i64: 32, 64>}, {pipeline_mode = #tpu.pipeline_mode<synchronous>, transform_indices = @transform_13, window_bounds = array<i64: 1, 64>}, {pipeline_mode = #tpu.pipeline_mode<synchronous>, transform_indices = @transform_14, window_bounds = array<i64: 32, 64>}, {pipeline_mode = #tpu.pipeline_mode<synchronous>, transform_indices = @transform_15, window_bounds = array<i64: 1, 64>}, {pipeline_mode = #tpu.pipeline_mode<synchronous>, transform_indices = @transform_16, window_bounds = array<i64: 64, 32>}, {pipeline_mode = #tpu.pipeline_mode<synchronous>, transform_indices = @transform_17, window_bounds = array<i64: 1, 32>}, {transform_indices = @transform_18, window_bounds = array<i64: 1, 8, 32>}]} {
    %c0_i32 = arith.constant 0 : i32
    %0 = arith.cmpi eq, %arg1, %c0_i32 : i32
    %1 = arith.extui %0 : i1 to i32
    %c0_i32_0 = arith.constant 0 : i32
    %2 = arith.cmpi ne, %1, %c0_i32_0 : i32
    scf.if %2 {
      %c0_76 = arith.constant 0 : index
      %c0_77 = arith.constant 0 : index
      %c0_78 = arith.constant 0 : index
      %166 = vector.load %arg3[%c0_76, %c0_77, %c0_78] : memref<1x12x32xf32, #tpu.memory_space<vmem>>, vector<1x12x32xf32>
      %167 = vector.shape_cast %166 : vector<1x12x32xf32> to vector<12x32xf32>
      %cst_79 = arith.constant dense<0.000000e+00> : vector<12xf32>
      %168 = vector.multi_reduction <add>, %167, %cst_79 [1] : vector<12x32xf32> to vector<12xf32>
      %169 = vector.shape_cast %168 : vector<12xf32> to vector<12x1xf32>
      %cst_80 = arith.constant 3.200000e+01 : f32
      %170 = vector.broadcast %cst_80 : f32 to vector<12x1xf32>
      %171 = arith.divf %169, %170 : vector<12x1xf32>
      %172 = vector.broadcast %171 : vector<12x1xf32> to vector<12x32xf32>
      %173 = arith.subf %167, %172 : vector<12x32xf32>
      %174 = arith.mulf %173, %173 : vector<12x32xf32>
      %cst_81 = arith.constant dense<0.000000e+00> : vector<12xf32>
      %175 = vector.multi_reduction <add>, %174, %cst_81 [1] : vector<12x32xf32> to vector<12xf32>
      %176 = vector.shape_cast %175 : vector<12xf32> to vector<12x1xf32>
      %cst_82 = arith.constant 3.200000e+01 : f32
      %177 = vector.broadcast %cst_82 : f32 to vector<12x1xf32>
      %178 = arith.divf %176, %177 : vector<12x1xf32>
      %cst_83 = arith.constant 9.99999974E-6 : f32
      %179 = vector.broadcast %cst_83 : f32 to vector<12x1xf32>
      %180 = arith.addf %178, %179 : vector<12x1xf32>
      %181 = math.rsqrt %180 : vector<12x1xf32>
      %182 = vector.broadcast %181 : vector<12x1xf32> to vector<12x32xf32>
      %183 = arith.mulf %173, %182 : vector<12x32xf32>
      %c0_84 = arith.constant 0 : index
      %c0_85 = arith.constant 0 : index
      %184 = vector.load %arg6[%c0_84, %c0_85] : memref<1x32xf32, #tpu.memory_space<vmem>>, vector<1x32xf32>
      %185 = vector.broadcast %184 : vector<1x32xf32> to vector<12x32xf32>
      %186 = arith.mulf %183, %185 : vector<12x32xf32>
      %c0_86 = arith.constant 0 : index
      %c0_87 = arith.constant 0 : index
      %187 = vector.load %arg7[%c0_86, %c0_87] : memref<1x32xf32, #tpu.memory_space<vmem>>, vector<1x32xf32>
      %188 = vector.broadcast %187 : vector<1x32xf32> to vector<12x32xf32>
      %189 = arith.addf %186, %188 : vector<12x32xf32>
      %190 = arith.truncf %189 : vector<12x32xf32> to vector<12x32xbf16>
      %c0_88 = arith.constant 0 : index
      %c0_89 = arith.constant 0 : index
      %191 = vector.load %arg9[%c0_88, %c0_89] : memref<32x64xbf16, #tpu.memory_space<vmem>>, vector<32x64xbf16>
      %cst_90 = arith.constant dense<0.000000e+00> : vector<12x64xf32>
      %192 = tpu.matmul %190, %191, %cst_90 {dimension_numbers = #tpu.dot_dimension_numbers<[1], [0], [0], [1], [0, 0, 1, 1], [], []>} : vector<12x32xbf16>, vector<32x64xbf16>, vector<12x64xf32> -> vector<12x64xf32>
      %193 = arith.truncf %192 : vector<12x64xf32> to vector<12x64xbf16>
      %c0_91 = arith.constant 0 : index
      %c0_92 = arith.constant 0 : index
      %194 = vector.load %arg21[%c0_91, %c0_92] : memref<12x64xbf16, #tpu.memory_space<vmem>>, vector<12x64xbf16>
      tpu.vector_store %arg21[%c0_91, %c0_92], %193 {strides = array<i32>} : memref<12x64xbf16, #tpu.memory_space<vmem>>, vector<12x64xbf16>,
    } else {
    }
    %c0 = arith.constant 0 : index
    %c0_1 = arith.constant 0 : index
    %c0_2 = arith.constant 0 : index
    %3 = vector.load %arg2[%c0, %c0_1, %c0_2] : memref<1x8x32xf32, #tpu.memory_space<vmem>>, vector<1x8x32xf32>
    %4 = vector.shape_cast %3 : vector<1x8x32xf32> to vector<8x32xf32>
    %cst = arith.constant dense<0.000000e+00> : vector<8xf32>
    %5 = vector.multi_reduction <add>, %4, %cst [1] : vector<8x32xf32> to vector<8xf32>
    %6 = vector.shape_cast %5 : vector<8xf32> to vector<8x1xf32>
    %cst_3 = arith.constant 3.200000e+01 : f32
    %7 = vector.broadcast %cst_3 : f32 to vector<8x1xf32>
    %8 = arith.divf %6, %7 : vector<8x1xf32>
    %9 = vector.broadcast %8 : vector<8x1xf32> to vector<8x32xf32>
    %10 = arith.subf %4, %9 : vector<8x32xf32>
    %11 = arith.mulf %10, %10 : vector<8x32xf32>
    %cst_4 = arith.constant dense<0.000000e+00> : vector<8xf32>
    %12 = vector.multi_reduction <add>, %11, %cst_4 [1] : vector<8x32xf32> to vector<8xf32>
    %13 = vector.shape_cast %12 : vector<8xf32> to vector<8x1xf32>
    %cst_5 = arith.constant 3.200000e+01 : f32
    %14 = vector.broadcast %cst_5 : f32 to vector<8x1xf32>
    %15 = arith.divf %13, %14 : vector<8x1xf32>
    %cst_6 = arith.constant 9.99999974E-6 : f32
    %16 = vector.broadcast %cst_6 : f32 to vector<8x1xf32>
    %17 = arith.addf %15, %16 : vector<8x1xf32>
    %18 = math.rsqrt %17 : vector<8x1xf32>
    %19 = vector.broadcast %18 : vector<8x1xf32> to vector<8x32xf32>
    %20 = arith.mulf %10, %19 : vector<8x32xf32>
    %c0_7 = arith.constant 0 : index
    %c0_8 = arith.constant 0 : index
    %21 = vector.load %arg4[%c0_7, %c0_8] : memref<1x32xf32, #tpu.memory_space<vmem>>, vector<1x32xf32>
    %22 = vector.broadcast %21 : vector<1x32xf32> to vector<8x32xf32>
    %23 = arith.mulf %20, %22 : vector<8x32xf32>
    %c0_9 = arith.constant 0 : index
    %c0_10 = arith.constant 0 : index
    %24 = vector.load %arg5[%c0_9, %c0_10] : memref<1x32xf32, #tpu.memory_space<vmem>>, vector<1x32xf32>
    %25 = vector.broadcast %24 : vector<1x32xf32> to vector<8x32xf32>
    %26 = arith.addf %23, %25 : vector<8x32xf32>
    %27 = arith.truncf %26 : vector<8x32xf32> to vector<8x32xbf16>
    %c0_11 = arith.constant 0 : index
    %c0_12 = arith.constant 0 : index
    %28 = vector.load %arg8[%c0_11, %c0_12] : memref<32x32xbf16, #tpu.memory_space<vmem>>, vector<32x32xbf16>
    %cst_13 = arith.constant dense<0.000000e+00> : vector<8x32xf32>
    %29 = tpu.matmul %27, %28, %cst_13 {dimension_numbers = #tpu.dot_dimension_numbers<[1], [0], [0], [1], [0, 0, 1, 1], [], []>} : vector<8x32xbf16>, vector<32x32xbf16>, vector<8x32xf32> -> vector<8x32xf32>
    %30 = arith.truncf %29 : vector<8x32xf32> to vector<8x32xbf16>
    %c0_14 = arith.constant 0 : index
    %c0_15 = arith.constant 0 : index
    %31 = vector.load %arg21[%c0_14, %c0_15] : memref<12x64xbf16, #tpu.memory_space<vmem>>, vector<12x32xbf16>
    %c0_16 = arith.constant 0 : index
    %c32 = arith.constant 32 : index
    %32 = vector.load %arg21[%c0_16, %c32] : memref<12x64xbf16, #tpu.memory_space<vmem>>, vector<12x32xbf16>
    %33 = vector.extract_strided_slice %30 {offsets = [0, 0], sizes = [8, 8], strides = [1, 1]} : vector<8x32xbf16> to vector<8x8xbf16>
    %34 = vector.extract_strided_slice %31 {offsets = [0, 0], sizes = [12, 8], strides = [1, 1]} : vector<12x32xbf16> to vector<12x8xbf16>
    %35 = vector.extract_strided_slice %32 {offsets = [0, 0], sizes = [12, 8], strides = [1, 1]} : vector<12x32xbf16> to vector<12x8xbf16>
    %cst_17 = arith.constant dense<0.000000e+00> : vector<8x12xf32>
    %36 = tpu.matmul %33, %34, %cst_17 {dimension_numbers = #tpu.dot_dimension_numbers<[1], [1], [0], [0], [0, 0, 1, 0], [], []>} : vector<8x8xbf16>, vector<12x8xbf16>, vector<8x12xf32> -> vector<8x12xf32>
    %cst_18 = arith.constant dense<0xFF800000> : vector<8xf32>
    %37 = vector.multi_reduction <maximumf>, %36, %cst_18 [1] : vector<8x12xf32> to vector<8xf32>
    %38 = vector.shape_cast %37 : vector<8xf32> to vector<8x1xf32>
    %39 = vector.broadcast %38 : vector<8x1xf32> to vector<8x12xf32>
    %40 = arith.subf %36, %39 : vector<8x12xf32>
    %41 = math.exp %40 : vector<8x12xf32>
    %cst_19 = arith.constant dense<0.000000e+00> : vector<8xf32>
    %42 = vector.multi_reduction <add>, %41, %cst_19 [1] : vector<8x12xf32> to vector<8xf32>
    %43 = vector.shape_cast %42 : vector<8xf32> to vector<8x1xf32>
    %44 = tpu.reciprocal %43 {approx = true} : vector<8x1xf32> -> vector<8x1xf32>
    %45 = vector.broadcast %44 : vector<8x1xf32> to vector<8x12xf32>
    %46 = arith.mulf %41, %45 : vector<8x12xf32>
    %47 = arith.truncf %46 : vector<8x12xf32> to vector<8x12xbf16>
    %cst_20 = arith.constant dense<0.000000e+00> : vector<8x8xf32>
    %48 = tpu.matmul %47, %35, %cst_20 {dimension_numbers = #tpu.dot_dimension_numbers<[1], [0], [0], [1], [0, 0, 1, 1], [], []>} : vector<8x12xbf16>, vector<12x8xbf16>, vector<8x8xf32> -> vector<8x8xf32>
    %c0_21 = arith.constant 0 : index
    %c0_22 = arith.constant 0 : index
    %49 = vector.load %arg22[%c0_21, %c0_22] : memref<8x32xf32, #tpu.memory_space<vmem>>, vector<8x8xf32>
    tpu.vector_store %arg22[%c0_21, %c0_22], %48 {strides = array<i32>} : memref<8x32xf32, #tpu.memory_space<vmem>>, vector<8x8xf32>,
    %50 = vector.extract_strided_slice %30 {offsets = [0, 8], sizes = [8, 8], strides = [1, 1]} : vector<8x32xbf16> to vector<8x8xbf16>
    %51 = vector.extract_strided_slice %31 {offsets = [0, 8], sizes = [12, 8], strides = [1, 1]} : vector<12x32xbf16> to vector<12x8xbf16>
    %52 = vector.extract_strided_slice %32 {offsets = [0, 8], sizes = [12, 8], strides = [1, 1]} : vector<12x32xbf16> to vector<12x8xbf16>
    %cst_23 = arith.constant dense<0.000000e+00> : vector<8x12xf32>
    %53 = tpu.matmul %50, %51, %cst_23 {dimension_numbers = #tpu.dot_dimension_numbers<[1], [1], [0], [0], [0, 0, 1, 0], [], []>} : vector<8x8xbf16>, vector<12x8xbf16>, vector<8x12xf32> -> vector<8x12xf32>
    %cst_24 = arith.constant dense<0xFF800000> : vector<8xf32>
    %54 = vector.multi_reduction <maximumf>, %53, %cst_24 [1] : vector<8x12xf32> to vector<8xf32>
    %55 = vector.shape_cast %54 : vector<8xf32> to vector<8x1xf32>
    %56 = vector.broadcast %55 : vector<8x1xf32> to vector<8x12xf32>
    %57 = arith.subf %53, %56 : vector<8x12xf32>
    %58 = math.exp %57 : vector<8x12xf32>
    %cst_25 = arith.constant dense<0.000000e+00> : vector<8xf32>
    %59 = vector.multi_reduction <add>, %58, %cst_25 [1] : vector<8x12xf32> to vector<8xf32>
    %60 = vector.shape_cast %59 : vector<8xf32> to vector<8x1xf32>
    %61 = tpu.reciprocal %60 {approx = true} : vector<8x1xf32> -> vector<8x1xf32>
    %62 = vector.broadcast %61 : vector<8x1xf32> to vector<8x12xf32>
    %63 = arith.mulf %58, %62 : vector<8x12xf32>
    %64 = arith.truncf %63 : vector<8x12xf32> to vector<8x12xbf16>
    %cst_26 = arith.constant dense<0.000000e+00> : vector<8x8xf32>
    %65 = tpu.matmul %64, %52, %cst_26 {dimension_numbers = #tpu.dot_dimension_numbers<[1], [0], [0], [1], [0, 0, 1, 1], [], []>} : vector<8x12xbf16>, vector<12x8xbf16>, vector<8x8xf32> -> vector<8x8xf32>
    %c0_27 = arith.constant 0 : index
    %c8 = arith.constant 8 : index
    %66 = vector.load %arg22[%c0_27, %c8] : memref<8x32xf32, #tpu.memory_space<vmem>>, vector<8x8xf32>
    tpu.vector_store %arg22[%c0_27, %c8], %65 {strides = array<i32>} : memref<8x32xf32, #tpu.memory_space<vmem>>, vector<8x8xf32>,
    %67 = vector.extract_strided_slice %30 {offsets = [0, 16], sizes = [8, 8], strides = [1, 1]} : vector<8x32xbf16> to vector<8x8xbf16>
    %68 = vector.extract_strided_slice %31 {offsets = [0, 16], sizes = [12, 8], strides = [1, 1]} : vector<12x32xbf16> to vector<12x8xbf16>
    %69 = vector.extract_strided_slice %32 {offsets = [0, 16], sizes = [12, 8], strides = [1, 1]} : vector<12x32xbf16> to vector<12x8xbf16>
    %cst_28 = arith.constant dense<0.000000e+00> : vector<8x12xf32>
    %70 = tpu.matmul %67, %68, %cst_28 {dimension_numbers = #tpu.dot_dimension_numbers<[1], [1], [0], [0], [0, 0, 1, 0], [], []>} : vector<8x8xbf16>, vector<12x8xbf16>, vector<8x12xf32> -> vector<8x12xf32>
    %cst_29 = arith.constant dense<0xFF800000> : vector<8xf32>
    %71 = vector.multi_reduction <maximumf>, %70, %cst_29 [1] : vector<8x12xf32> to vector<8xf32>
    %72 = vector.shape_cast %71 : vector<8xf32> to vector<8x1xf32>
    %73 = vector.broadcast %72 : vector<8x1xf32> to vector<8x12xf32>
    %74 = arith.subf %70, %73 : vector<8x12xf32>
    %75 = math.exp %74 : vector<8x12xf32>
    %cst_30 = arith.constant dense<0.000000e+00> : vector<8xf32>
    %76 = vector.multi_reduction <add>, %75, %cst_30 [1] : vector<8x12xf32> to vector<8xf32>
    %77 = vector.shape_cast %76 : vector<8xf32> to vector<8x1xf32>
    %78 = tpu.reciprocal %77 {approx = true} : vector<8x1xf32> -> vector<8x1xf32>
    %79 = vector.broadcast %78 : vector<8x1xf32> to vector<8x12xf32>
    %80 = arith.mulf %75, %79 : vector<8x12xf32>
    %81 = arith.truncf %80 : vector<8x12xf32> to vector<8x12xbf16>
    %cst_31 = arith.constant dense<0.000000e+00> : vector<8x8xf32>
    %82 = tpu.matmul %81, %69, %cst_31 {dimension_numbers = #tpu.dot_dimension_numbers<[1], [0], [0], [1], [0, 0, 1, 1], [], []>} : vector<8x12xbf16>, vector<12x8xbf16>, vector<8x8xf32> -> vector<8x8xf32>
    %c0_32 = arith.constant 0 : index
    %c16 = arith.constant 16 : index
    %83 = vector.load %arg22[%c0_32, %c16] : memref<8x32xf32, #tpu.memory_space<vmem>>, vector<8x8xf32>
    tpu.vector_store %arg22[%c0_32, %c16], %82 {strides = array<i32>} : memref<8x32xf32, #tpu.memory_space<vmem>>, vector<8x8xf32>,
    %84 = vector.extract_strided_slice %30 {offsets = [0, 24], sizes = [8, 8], strides = [1, 1]} : vector<8x32xbf16> to vector<8x8xbf16>
    %85 = vector.extract_strided_slice %31 {offsets = [0, 24], sizes = [12, 8], strides = [1, 1]} : vector<12x32xbf16> to vector<12x8xbf16>
    %86 = vector.extract_strided_slice %32 {offsets = [0, 24], sizes = [12, 8], strides = [1, 1]} : vector<12x32xbf16> to vector<12x8xbf16>
    %cst_33 = arith.constant dense<0.000000e+00> : vector<8x12xf32>
    %87 = tpu.matmul %84, %85, %cst_33 {dimension_numbers = #tpu.dot_dimension_numbers<[1], [1], [0], [0], [0, 0, 1, 0], [], []>} : vector<8x8xbf16>, vector<12x8xbf16>, vector<8x12xf32> -> vector<8x12xf32>
    %cst_34 = arith.constant dense<0xFF800000> : vector<8xf32>
    %88 = vector.multi_reduction <maximumf>, %87, %cst_34 [1] : vector<8x12xf32> to vector<8xf32>
    %89 = vector.shape_cast %88 : vector<8xf32> to vector<8x1xf32>
    %90 = vector.broadcast %89 : vector<8x1xf32> to vector<8x12xf32>
    %91 = arith.subf %87, %90 : vector<8x12xf32>
    %92 = math.exp %91 : vector<8x12xf32>
    %cst_35 = arith.constant dense<0.000000e+00> : vector<8xf32>
    %93 = vector.multi_reduction <add>, %92, %cst_35 [1] : vector<8x12xf32> to vector<8xf32>
    %94 = vector.shape_cast %93 : vector<8xf32> to vector<8x1xf32>
    %95 = tpu.reciprocal %94 {approx = true} : vector<8x1xf32> -> vector<8x1xf32>
    %96 = vector.broadcast %95 : vector<8x1xf32> to vector<8x12xf32>
    %97 = arith.mulf %92, %96 : vector<8x12xf32>
    %98 = arith.truncf %97 : vector<8x12xf32> to vector<8x12xbf16>
    %cst_36 = arith.constant dense<0.000000e+00> : vector<8x8xf32>
    %99 = tpu.matmul %98, %86, %cst_36 {dimension_numbers = #tpu.dot_dimension_numbers<[1], [0], [0], [1], [0, 0, 1, 1], [], []>} : vector<8x12xbf16>, vector<12x8xbf16>, vector<8x8xf32> -> vector<8x8xf32>
    %c0_37 = arith.constant 0 : index
    %c24 = arith.constant 24 : index
    %100 = vector.load %arg22[%c0_37, %c24] : memref<8x32xf32, #tpu.memory_space<vmem>>, vector<8x8xf32>
    tpu.vector_store %arg22[%c0_37, %c24], %99 {strides = array<i32>} : memref<8x32xf32, #tpu.memory_space<vmem>>, vector<8x8xf32>,
    %c0_38 = arith.constant 0 : index
    %c0_39 = arith.constant 0 : index
    %101 = vector.load %arg22[%c0_38, %c0_39] : memref<8x32xf32, #tpu.memory_space<vmem>>, vector<8x32xf32>
    %102 = arith.truncf %101 : vector<8x32xf32> to vector<8x32xbf16>
    %c0_40 = arith.constant 0 : index
    %c0_41 = arith.constant 0 : index
    %103 = vector.load %arg10[%c0_40, %c0_41] : memref<32x32xbf16, #tpu.memory_space<vmem>>, vector<32x32xbf16>
    %cst_42 = arith.constant dense<0.000000e+00> : vector<8x32xf32>
    %104 = tpu.matmul %102, %103, %cst_42 {dimension_numbers = #tpu.dot_dimension_numbers<[1], [0], [0], [1], [0, 0, 1, 1], [], []>} : vector<8x32xbf16>, vector<32x32xbf16>, vector<8x32xf32> -> vector<8x32xf32>
    %c0_43 = arith.constant 0 : index
    %c0_44 = arith.constant 0 : index
    %105 = vector.load %arg11[%c0_43, %c0_44] : memref<1x32xf32, #tpu.memory_space<vmem>>, vector<1x32xf32>
    %106 = vector.broadcast %105 : vector<1x32xf32> to vector<8x32xf32>
    %107 = arith.addf %104, %106 : vector<8x32xf32>
    %108 = arith.addf %26, %107 : vector<8x32xf32>
    %cst_45 = arith.constant dense<0.000000e+00> : vector<8xf32>
    %109 = vector.multi_reduction <add>, %108, %cst_45 [1] : vector<8x32xf32> to vector<8xf32>
    %110 = vector.shape_cast %109 : vector<8xf32> to vector<8x1xf32>
    %cst_46 = arith.constant 3.200000e+01 : f32
    %111 = vector.broadcast %cst_46 : f32 to vector<8x1xf32>
    %112 = arith.divf %110, %111 : vector<8x1xf32>
    %113 = vector.broadcast %112 : vector<8x1xf32> to vector<8x32xf32>
    %114 = arith.subf %108, %113 : vector<8x32xf32>
    %115 = arith.mulf %114, %114 : vector<8x32xf32>
    %cst_47 = arith.constant dense<0.000000e+00> : vector<8xf32>
    %116 = vector.multi_reduction <add>, %115, %cst_47 [1] : vector<8x32xf32> to vector<8xf32>
    %117 = vector.shape_cast %116 : vector<8xf32> to vector<8x1xf32>
    %cst_48 = arith.constant 3.200000e+01 : f32
    %118 = vector.broadcast %cst_48 : f32 to vector<8x1xf32>
    %119 = arith.divf %117, %118 : vector<8x1xf32>
    %cst_49 = arith.constant 9.99999974E-6 : f32
    %120 = vector.broadcast %cst_49 : f32 to vector<8x1xf32>
    %121 = arith.addf %119, %120 : vector<8x1xf32>
    %122 = math.rsqrt %121 : vector<8x1xf32>
    %123 = vector.broadcast %122 : vector<8x1xf32> to vector<8x32xf32>
    %124 = arith.mulf %114, %123 : vector<8x32xf32>
    %c0_50 = arith.constant 0 : index
    %c0_51 = arith.constant 0 : index
    %125 = vector.load %arg12[%c0_50, %c0_51] : memref<1x32xf32, #tpu.memory_space<vmem>>, vector<1x32xf32>
    %126 = vector.broadcast %125 : vector<1x32xf32> to vector<8x32xf32>
    %127 = arith.mulf %124, %126 : vector<8x32xf32>
    %c0_52 = arith.constant 0 : index
    %c0_53 = arith.constant 0 : index
    %128 = vector.load %arg13[%c0_52, %c0_53] : memref<1x32xf32, #tpu.memory_space<vmem>>, vector<1x32xf32>
    %129 = vector.broadcast %128 : vector<1x32xf32> to vector<8x32xf32>
    %130 = arith.addf %127, %129 : vector<8x32xf32>
    %131 = arith.truncf %130 : vector<8x32xf32> to vector<8x32xbf16>
    %c0_54 = arith.constant 0 : index
    %c0_55 = arith.constant 0 : index
    %132 = vector.load %arg16[%c0_54, %c0_55] : memref<32x64xbf16, #tpu.memory_space<vmem>>, vector<32x64xbf16>
    %cst_56 = arith.constant dense<0.000000e+00> : vector<8x64xf32>
    %133 = tpu.matmul %131, %132, %cst_56 {dimension_numbers = #tpu.dot_dimension_numbers<[1], [0], [0], [1], [0, 0, 1, 1], [], []>} : vector<8x32xbf16>, vector<32x64xbf16>, vector<8x64xf32> -> vector<8x64xf32>
    %c0_57 = arith.constant 0 : index
    %c0_58 = arith.constant 0 : index
    %134 = vector.load %arg17[%c0_57, %c0_58] : memref<1x64xf32, #tpu.memory_space<vmem>>, vector<1x64xf32>
    %135 = vector.broadcast %134 : vector<1x64xf32> to vector<8x64xf32>
    %136 = arith.addf %133, %135 : vector<8x64xf32>
    %c0_59 = arith.constant 0 : index
    %c0_60 = arith.constant 0 : index
    %137 = vector.load %arg14[%c0_59, %c0_60] : memref<32x64xbf16, #tpu.memory_space<vmem>>, vector<32x64xbf16>
    %cst_61 = arith.constant dense<0.000000e+00> : vector<8x64xf32>
    %138 = tpu.matmul %131, %137, %cst_61 {dimension_numbers = #tpu.dot_dimension_numbers<[1], [0], [0], [1], [0, 0, 1, 1], [], []>} : vector<8x32xbf16>, vector<32x64xbf16>, vector<8x64xf32> -> vector<8x64xf32>
    %c0_62 = arith.constant 0 : index
    %c0_63 = arith.constant 0 : index
    %139 = vector.load %arg15[%c0_62, %c0_63] : memref<1x64xf32, #tpu.memory_space<vmem>>, vector<1x64xf32>
    %140 = vector.broadcast %139 : vector<1x64xf32> to vector<8x64xf32>
    %141 = arith.addf %138, %140 : vector<8x64xf32>
    %cst_64 = arith.constant 5.000000e-01 : f32
    %142 = vector.broadcast %cst_64 : f32 to vector<8x64xf32>
    %143 = arith.mulf %142, %136 : vector<8x64xf32>
    %144 = arith.mulf %136, %136 : vector<8x64xf32>
    %145 = arith.mulf %144, %136 : vector<8x64xf32>
    %cst_65 = arith.constant 4.471500e-02 : f32
    %146 = vector.broadcast %cst_65 : f32 to vector<8x64xf32>
    %147 = arith.mulf %146, %145 : vector<8x64xf32>
    %148 = arith.addf %136, %147 : vector<8x64xf32>
    %cst_66 = arith.constant 0.797884583 : f32
    %149 = vector.broadcast %cst_66 : f32 to vector<8x64xf32>
    %150 = arith.mulf %149, %148 : vector<8x64xf32>
    %151 = math.tanh %150 : vector<8x64xf32>
    %cst_67 = arith.constant 1.000000e+00 : f32
    %152 = vector.broadcast %cst_67 : f32 to vector<8x64xf32>
    %153 = arith.addf %152, %151 : vector<8x64xf32>
    %154 = arith.mulf %143, %153 : vector<8x64xf32>
    %155 = arith.mulf %141, %154 : vector<8x64xf32>
    %156 = arith.truncf %155 : vector<8x64xf32> to vector<8x64xbf16>
    %c0_68 = arith.constant 0 : index
    %c0_69 = arith.constant 0 : index
    %157 = vector.load %arg18[%c0_68, %c0_69] : memref<64x32xbf16, #tpu.memory_space<vmem>>, vector<64x32xbf16>
    %cst_70 = arith.constant dense<0.000000e+00> : vector<8x32xf32>
    %158 = tpu.matmul %156, %157, %cst_70 {dimension_numbers = #tpu.dot_dimension_numbers<[1], [0], [0], [1], [0, 0, 1, 1], [], []>} : vector<8x64xbf16>, vector<64x32xbf16>, vector<8x32xf32> -> vector<8x32xf32>
    %c0_71 = arith.constant 0 : index
    %c0_72 = arith.constant 0 : index
    %159 = vector.load %arg19[%c0_71, %c0_72] : memref<1x32xf32, #tpu.memory_space<vmem>>, vector<1x32xf32>
    %160 = vector.broadcast %159 : vector<1x32xf32> to vector<8x32xf32>
    %161 = arith.addf %158, %160 : vector<8x32xf32>
    %162 = arith.addf %130, %161 : vector<8x32xf32>
    %c0_73 = arith.constant 0 : index
    %c0_74 = arith.constant 0 : index
    %c0_75 = arith.constant 0 : index
    %163 = vector.load %arg20[%c0_73, %c0_74, %c0_75] : memref<1x8x32xf32, #tpu.memory_space<vmem>>, vector<1x8x32xf32>
    %164 = vector.shape_cast %163 : vector<1x8x32xf32> to vector<8x32xf32>
    %165 = vector.shape_cast %162 : vector<8x32xf32> to vector<1x8x32xf32>
    tpu.vector_store %arg20[%c0_73, %c0_74, %c0_75], %165 {strides = array<i32>} : memref<1x8x32xf32, #tpu.memory_space<vmem>>, vector<1x8x32xf32>,
    return
  }
  func.func @transform_0(%arg0: i32, %arg1: i32) -> (i32, i32, i32) {
    %c0_i32 = arith.constant 0 : i32
    %c0_i32_0 = arith.constant 0 : i32
    return %arg0, %arg1, %c0_i32 : i32, i32, i32
  }
  func.func @transform_1(%arg0: i32, %arg1: i32) -> (i32, i32, i32) {
    %c0_i32 = arith.constant 0 : i32
    %c0_i32_0 = arith.constant 0 : i32
    %c0_i32_1 = arith.constant 0 : i32
    return %arg0, %c0_i32, %c0_i32_0 : i32, i32, i32
  }
  func.func @transform_2(%arg0: i32, %arg1: i32) -> (i32, i32) {
    %c0_i32 = arith.constant 0 : i32
    %c0_i32_0 = arith.constant 0 : i32
    %c0_i32_1 = arith.constant 0 : i32
    return %c0_i32, %c0_i32_0 : i32, i32
  }
  func.func @transform_3(%arg0: i32, %arg1: i32) -> (i32, i32) {
    %c0_i32 = arith.constant 0 : i32
    %c0_i32_0 = arith.constant 0 : i32
    %c0_i32_1 = arith.constant 0 : i32
    return %c0_i32, %c0_i32_0 : i32, i32
  }
  func.func @transform_4(%arg0: i32, %arg1: i32) -> (i32, i32) {
    %c0_i32 = arith.constant 0 : i32
    %c0_i32_0 = arith.constant 0 : i32
    %c0_i32_1 = arith.constant 0 : i32
    return %c0_i32, %c0_i32_0 : i32, i32
  }
  func.func @transform_5(%arg0: i32, %arg1: i32) -> (i32, i32) {
    %c0_i32 = arith.constant 0 : i32
    %c0_i32_0 = arith.constant 0 : i32
    %c0_i32_1 = arith.constant 0 : i32
    return %c0_i32, %c0_i32_0 : i32, i32
  }
  func.func @transform_6(%arg0: i32, %arg1: i32) -> (i32, i32) {
    %c0_i32 = arith.constant 0 : i32
    %c0_i32_0 = arith.constant 0 : i32
    %c0_i32_1 = arith.constant 0 : i32
    return %c0_i32, %c0_i32_0 : i32, i32
  }
  func.func @transform_7(%arg0: i32, %arg1: i32) -> (i32, i32) {
    %c0_i32 = arith.constant 0 : i32
    %c0_i32_0 = arith.constant 0 : i32
    %c0_i32_1 = arith.constant 0 : i32
    return %c0_i32, %c0_i32_0 : i32, i32
  }
  func.func @transform_8(%arg0: i32, %arg1: i32) -> (i32, i32) {
    %c0_i32 = arith.constant 0 : i32
    %c0_i32_0 = arith.constant 0 : i32
    %c0_i32_1 = arith.constant 0 : i32
    return %c0_i32, %c0_i32_0 : i32, i32
  }
  func.func @transform_9(%arg0: i32, %arg1: i32) -> (i32, i32) {
    %c0_i32 = arith.constant 0 : i32
    %c0_i32_0 = arith.constant 0 : i32
    %c0_i32_1 = arith.constant 0 : i32
    return %c0_i32, %c0_i32_0 : i32, i32
  }
  func.func @transform_10(%arg0: i32, %arg1: i32) -> (i32, i32) {
    %c0_i32 = arith.constant 0 : i32
    %c0_i32_0 = arith.constant 0 : i32
    %c0_i32_1 = arith.constant 0 : i32
    return %c0_i32, %c0_i32_0 : i32, i32
  }
  func.func @transform_11(%arg0: i32, %arg1: i32) -> (i32, i32) {
    %c0_i32 = arith.constant 0 : i32
    %c0_i32_0 = arith.constant 0 : i32
    %c0_i32_1 = arith.constant 0 : i32
    return %c0_i32, %c0_i32_0 : i32, i32
  }
  func.func @transform_12(%arg0: i32, %arg1: i32) -> (i32, i32) {
    %c0_i32 = arith.constant 0 : i32
    %c0_i32_0 = arith.constant 0 : i32
    %c0_i32_1 = arith.constant 0 : i32
    return %c0_i32, %c0_i32_0 : i32, i32
  }
  func.func @transform_13(%arg0: i32, %arg1: i32) -> (i32, i32) {
    %c0_i32 = arith.constant 0 : i32
    %c0_i32_0 = arith.constant 0 : i32
    %c0_i32_1 = arith.constant 0 : i32
    return %c0_i32, %c0_i32_0 : i32, i32
  }
  func.func @transform_14(%arg0: i32, %arg1: i32) -> (i32, i32) {
    %c0_i32 = arith.constant 0 : i32
    %c0_i32_0 = arith.constant 0 : i32
    %c0_i32_1 = arith.constant 0 : i32
    return %c0_i32, %c0_i32_0 : i32, i32
  }
  func.func @transform_15(%arg0: i32, %arg1: i32) -> (i32, i32) {
    %c0_i32 = arith.constant 0 : i32
    %c0_i32_0 = arith.constant 0 : i32
    %c0_i32_1 = arith.constant 0 : i32
    return %c0_i32, %c0_i32_0 : i32, i32
  }
  func.func @transform_16(%arg0: i32, %arg1: i32) -> (i32, i32) {
    %c0_i32 = arith.constant 0 : i32
    %c0_i32_0 = arith.constant 0 : i32
    %c0_i32_1 = arith.constant 0 : i32
    return %c0_i32, %c0_i32_0 : i32, i32
  }
  func.func @transform_17(%arg0: i32, %arg1: i32) -> (i32, i32) {
    %c0_i32 = arith.constant 0 : i32
    %c0_i32_0 = arith.constant 0 : i32
    %c0_i32_1 = arith.constant 0 : i32
    return %c0_i32, %c0_i32_0 : i32, i32
  }
  func.func @transform_18(%arg0: i32, %arg1: i32) -> (i32, i32, i32) {
    %c0_i32 = arith.constant 0 : i32
    %c0_i32_0 = arith.constant 0 : i32
    return %arg0, %arg1, %c0_i32 : i32, i32, i32
  }
}

</mosaic_0001>

<bundles_post_ra>
// kernel: lbanp_causal_decoder_layer.1
= control target key start
LH: loop header
LB: loop body
LE: loop exit
PB: predicated region body
PF: predicated region fallthrough
CT: control target
= control target key end

     0   :  { %s1996_s0 = inlined_call_operand.vmem [shape: f32[2,8,32], index: 0, kind: input, shape index: {}]   ;;  %s1997_s1 = inlined_call_operand.vmem [shape: f32[2,12,32], index: 1, kind: input, shape index: {}]   ;;  %s1998_s2 = inlined_call_operand.vmem [shape: f32[1,32], index: 2, kind: input, shape index: {}]   ;;  %s1999_s3 = inlined_call_operand.vmem [shape: f32[1,32], index: 3, kind: input, shape index: {}]   ;;  %s2000_s4 = inlined_call_operand.vmem [shape: f32[1,32], index: 4, kind: input, shape index: {}]   ;;  %s2001_s5 = inlined_call_operand.vmem [shape: f32[1,32], index: 5, kind: input, shape index: {}]   ;;  %s2002_s6 = inlined_call_operand.vmem [shape: bf16[32,32], index: 6, kind: input, shape index: {}]   ;;  %s2003_s7 = inlined_call_operand.vmem [shape: bf16[32,64], index: 7, kind: input, shape index: {}]   ;;  %s2004_s8 = inlined_call_operand.vmem [shape: bf16[32,32], index: 8, kind: input, shape index: {}]   ;;  %s2005_s9 = inlined_call_operand.vmem [shape: f32[1,32], index: 9, kind: input, shape index: {}]   ;;  %s2006_s10 = inlined_call_operand.vmem [shape: f32[1,32], index: 10, kind: input, shape index: {}]   ;;  %s2007_s11 = inlined_call_operand.vmem [shape: f32[1,32], index: 11, kind: input, shape index: {}]   ;;  %s2008_s12 = inlined_call_operand.vmem [shape: bf16[32,64], index: 12, kind: input, shape index: {}]   ;;  %s2009_s13 = inlined_call_operand.vmem [shape: f32[1,64], index: 13, kind: input, shape index: {}]   ;;  %s2010_s14 = inlined_call_operand.vmem [shape: bf16[32,64], index: 14, kind: input, shape index: {}]   ;;  %s2011_s15 = inlined_call_operand.vmem [shape: f32[1,64], index: 15, kind: input, shape index: {}]   ;;  %s2012_s16 = inlined_call_operand.vmem [shape: bf16[64,32], index: 16, kind: input, shape index: {}]   ;;  %s2013_s17 = inlined_call_operand.vmem [shape: f32[1,32], index: 17, kind: input, shape index: {}]   ;;  %s2014_s18 = inlined_call_operand.hbm [shape: f32[2,8,32], index: 18, kind: output, shape index: {}]  }
   0x1   :  { %2022 = sst [smem:[#allocation12_spill]] %s1996_s0 }
   0x2   :  { %2023 = sst [smem:[#allocation13_spill]] %s1997_s1 }
   0x3   :  { %2024 = sst [smem:[#allocation14_spill]] %s1998_s2 }
   0x4   :  { %2025 = sst [smem:[#allocation15_spill]] %s1999_s3 }
   0x5   :  { %2026 = sst [smem:[#allocation16_spill]] %s2000_s4 }
   0x6   :  { %2027 = sst [smem:[#allocation17_spill]] %s2001_s5 }
   0x7   :  { %2028 = sst [smem:[#allocation18_spill]] %s2013_s17 }
   0x8   :  { %2029 = sst [smem:[#allocation19_spill]] %s2014_s18 }
   0x9   :  { %23 = vsyncpa [#allocation5], 0 }
   0xa   :  { %25 = vsyncpa [#allocation5 + $0x1], 0  ;;  %s1755_s27 = smov 0   ;;  %s1757_s28 = smov 0  }
   0xb   :  { %s1759_s29 = smov 0   ;;  %s1761_s30 = smov 0  }
   0xc   :  { %s1763_s0 = smov 0   ;;  %s1765_s19 = smov 0  }
   0xd LB: > { %2030 = sst [smem:[#allocation7_spill]] %s1627_s27  ;;  %s1362_s1 = sadd.s32 4294967295, %s1647_s19   ;;  %s1647_s19 = sphi %s1765_s19, %s31_s19   ;;  %s1643_s0 = sphi %s1763_s0, %s2049_s0   ;;  %s1639_s30 = sphi %s1761_s30, %s2048_s30   ;;  %s1635_s29 = sphi %s1759_s29, %s2052_s29   ;;  %s1631_s28 = sphi %s1757_s28, %s2051_s28   ;;  %s1627_s27 = sphi %s1755_s27, %s2050_s27  }
   0xe   : > { %2031 = sst [smem:[#allocation8_spill]] %s1643_s0  ;;  %s1363_s20 = sadd.s32 4294967294, %s1647_s19  }
   0xf   : > { %s43_s21 = sadd.s32 1, %s1643_s0  ;;  %s442_s22 = sadd.s32 1, %s1635_s29 }
  0x10   : > { %p45_p0 = scmp.ge.s32.totalorder %s43_s21, 2  ;;  %p452_p1 = scmp.ne.s32.totalorder %s1635_s29, %s1631_s28 }
  0x11   : > { %p453_p2 = scmp.eq.s32.totalorder %s1362_s1, 1  ;;  %p458_p3 = scmp.ne.s32.totalorder %s1631_s28, %s1627_s27 }
  0x12   : > { %s2054_s21 = smov (%p45_p0, %s43_s21), 0  ;;  %p459_p5 = scmp.eq.s32.totalorder %s1363_s20, 1 }
  0x13   : > { %2032 = sst [smem:[#allocation9_spill]] %s2054_s21  ;;  %p1795_p4 = por %p453_p2, %p452_p1 }
  0x14   : > { %s437_s23 = ssub.s32 %s1643_s0, %s2054_s21  ;;  %p1366_p6 = scmp.ge.s32.totalorder %s1647_s19, 1 }
  0x15   : > { %s2033_s2 = scalar_select %p1795_p4, 1, 0 }
  0x16   : > { %p440_p7 = scmp.eq.s32.totalorder %s437_s23, 0  ;;  %p1802_p8 = por %p459_p5, %p458_p3 }
  0x17   : > { %2034 = sst [smem:[#allocation10_spill]] %s2033_s2  ;;  %p543_p9 = scmp.lt.s32.totalorder %s1647_s19, 3 }
  0x18   : > { %s2035_s24 = scalar_select %p1802_p8, 1, 0 }
  0x19   : > { %s1808_s25 = scalar_select %p440_p7, %s1635_s29, %s442_s22  }
  0x1a   : > { %2036 = sst [smem:[#allocation11_spill]] %s2035_s24  ;;  %p544_p10 = pnand %p1366_p6, %p543_p9 }
  0x1b   : > { %p604_p11 = scmp.lt.s32.totalorder (!%p544_p10), %s1639_s30, 1  ;;  %s2037_s0 = sld [smem:[#allocation13_spill]] (!%p544_p10) }
  0x1c   : > { %547 = sbr.rel (%p544_p10) target bundleno = 2234 (0x8ba), region = 92  ;;  %s2038_s17 = sld [smem:[#allocation12_spill]] (!%p544_p10) }
  0x1d   : > { %s2039_s4 = sld [smem:[#allocation16_spill]] (!%p544_p10)  ;;  %s1650_s22 = smov (!%p544_p10), 96  }
  0x1e   : > { %s2040_s5 = sld [smem:[#allocation17_spill]] (!%p544_p10)  ;;  %s1651_s2 = smov (!%p544_p10), 112  }
  0x1f   : > { %s2042_s3 = sld [smem:[#allocation15_spill]] (!%p544_p10)  ;;  %s1655_s20 = smov (!%p544_p10), 80  }
  0x20   : > { %s1658_s18 = smov (!%p544_p10), 16  }
  0x21   : > { %s605_s26 = scalar_select %p604_p11, %s1639_s30, 1  ;;  %vm623_vm0 = vcmask 261120   ;;  %vm627_vm1 = vcmask 257024   ;;  %v1649_v6 = vmov 32.0   ;;  %v1451_v28 = vld [vmem:[%s2003_s7 + $0x8] sm:$0xff]  ;;  %v1450_v31 = vld [vmem:[%s2003_s7] sm:$0xff] }
  0x22   : > { %1541 = vrcp.f32 %v1649_v6  ;;  %714 = vmatpush.bf16.msra.mxu0 %v1451_v28  ;;  %v1453_v33 = vld [vmem:[%s2002_s6 + $0x8] sm:$0xff]  ;;  %v1452_v35 = vld [vmem:[%s2002_s6] sm:$0xff]  ;;  %vm724_vm12 = vcmask 519168   ;;  %vm726_vm13 = vcmask 517120   ;;  %vm810_vm14 = vcmask 64512  }
  0x23   : > { %s1449_s1 = sshll.u32 %s605_s26, 4  ;;  %s1368_s27 = sshll.u32 %s605_s26, 3  ;;  %795 = vmatpush.bf16.msra.mxu1 %v1453_v33  ;;  %v1531_v55 = vld [vmem:[%s2039_s4] ss:$0 sm:$0xff]  ;;  %vm848_vm15 = vcmask 1045504  }
  0x24   : > { %s615_s23 = scalar_lea.vmem %s2037_s0, %s1449_s1  ;;  %s610_s24 = scalar_lea.vmem %s2038_s17, %s1368_s27  ;;  %v1532_v62 = vld [vmem:[%s2040_s5] ss:$0 sm:$0xff] }
  0x25   : > { %v621_v0 = vld [vmem:[%s615_s23] sm:$0xff]  ;;  %v622_v4 = vld [vmem:[%s615_s23 + $0x8] sm:$0xf]  ;;  %s2041_s27 = sld [smem:[#allocation14_spill]]  ;;  %s1653_s26 = smov 104  }
  0x26   : > { %v728_v1 = vld [vmem:[%s610_s24] sm:$0xff]  ;;  %v624_v2 = vsel %vm623_vm0, %v621_v0, 0.0  ;;  %v628_v5 = vsel %vm627_vm1, %v622_v4, 0.0  ;;  %715 = vmatpush.bf16.msra.mxu0 %v1450_v31  ;;  %s1652_s24 = smov 120   ;;  %s1654_s1 = smov 88  }
  0x27   : > { %v730_v3 = vsel %vm623_vm0, %v728_v1, 0.0  ;;  %625 = vadd.xlane.f32.xlu0 %v624_v2  ;;  %796 = vmatpush.bf16.msra.mxu1 %v1452_v35  ;;  %s1656_s23 = smov 72   ;;  %s1657_s17 = smov 8  }
  0x28   : > { %731 = vadd.xlane.f32.xlu1 %v730_v3  ;;  %v1542_v7 = vpop.eup %1541 }
  0x29   : > { %v632_v8 = vmul.f32 32.0, %v1542_v7  ;;  %vm636_vm2 = vweird.f32 %v1542_v7 }
  0x2b   : > { %v633_v9 = vsub.f32 1.0, %v632_v8  ;;  %v1533_v6 = vld [vmem:[%s2041_s27] ss:$0 sm:$0xff]  ;;  %s1659_s27 = smov 24  }
  0x2d   : > { %v634_v10 = vmul.f32 %v1542_v7, %v633_v9  ;;  %v1534_v9 = vld [vmem:[%s2042_s3] ss:$0 sm:$0xff] }
  0x2f   : > { %629 = vadd.xlane.f32.xlu0 %v628_v5  ;;  %v635_v11 = vadd.f32 %v1542_v7, %v634_v10 }
  0x31   : > { %v1821_v12 = vsel %vm636_vm2, %v1542_v7, %v635_v11  ;;  %vm929_vm2 = vcmask 130112  }
  0x9a   : > { %v626_v13 = vpop.xlane.xlu0 %625 }
  0x9b   : > { %v638_v14 = vmul.f32 %v1821_v12, %v626_v13  ;;  %v732_v17 = vpop.xlane.xlu1 %731 }
  0x9c   : > { %v740_v21 = vmul.f32 %v732_v17, %v1821_v12 }
  0x9d   : > { %v640_v15 = vsub.f32 %v621_v0, %v638_v14 }
  0x9e   : > { %v1827_v24 = vsub.f32 %v728_v1, %v740_v21 }
  0x9f   : > { %v642_v16 = vmul.f32 %v640_v15, %v640_v15 }
  0xa0   : > { %v742_v26 = vmul.f32 %v1827_v24, %v1827_v24 }
  0xa1   : > { %v644_v18 = vsel %vm623_vm0, %v642_v16, 0.0 }
  0xa2   : > { %v630_v19 = vpop.xlane.xlu0 %629  ;;  %645 = vadd.xlane.f32.xlu1 %v644_v18  ;;  %v743_v27 = vsel %vm623_vm0, %v742_v26, 0.0 }
  0xa3   : > { %v639_v20 = vmul.f32 %v1821_v12, %v630_v19 }
  0xa5   : > { %v641_v22 = vsub.f32 %v622_v4, %v639_v20 }
  0xa7   : > { %v643_v23 = vmul.f32 %v641_v22, %v641_v22 }
  0xa9   : > { %v647_v25 = vsel %vm627_vm1, %v643_v23, 0.0  ;;  %vm830_vm1 = vcmask 97280  }
  0xaa   : > { %648 = vadd.xlane.f32.xlu2 %v647_v25 }
  0xb2   : > { %744 = vadd.xlane.f32.xlu2 %v743_v27 }
 0x115   : > { %v646_v29 = vpop.xlane.xlu1 %645 }
 0x116   : > { %v650_v30 = vmul.f32 %v646_v29, %v1821_v12 }
 0x118   : > { %v652_v32 = vadd.f32 1e-05, %v650_v30 }
 0x11a   : > { %1543 = vrsqrt.f32 %v652_v32  ;;  %vm660_vm4 = vweird.f32 %v652_v32 }
 0x11d   : > { %v649_v34 = vpop.xlane.xlu2 %648 }
 0x11e   : > { %v651_v36 = vmul.f32 %v649_v34, %v1821_v12 }
 0x120   : > { %v1544_v37 = vpop.eup %1543  ;;  %v653_v38 = vadd.f32 1e-05, %v651_v36 }
 0x121   : > { %v655_v39 = vmul.f32 %v1544_v37, %v652_v32  ;;  %vm661_vm3 = vweird.f32 %v1544_v37 }
 0x122   : > { %1545 = vrsqrt.f32 %v653_v38  ;;  %vm662_vm5 = vmor %vm660_vm4, %vm661_vm3  ;;  %vm670_vm7 = vweird.f32 %v653_v38  ;;  %vm991_vm3 = vcmask 195712   ;;  %vm1053_vm4 = vcmask 261312  }
 0x123   : > { %v656_v40 = vmul.f32 %v1544_v37, %v655_v39 }
 0x125   : > { %v657_v41 = vmul.f32 0.5, %v656_v40  ;;  %v745_v42 = vpop.xlane.xlu2 %744 }
 0x126   : > { %v746_v43 = vmul.f32 %v745_v42, %v1821_v12 }
 0x127   : > { %v658_v44 = vsub.f32 1.5, %v657_v41 }
 0x128   : > { %v1546_v45 = vpop.eup %1545  ;;  %v747_v46 = vadd.f32 1e-05, %v746_v43 }
 0x129   : > { %v659_v47 = vmul.f32 %v1544_v37, %v658_v44  ;;  %v665_v48 = vmul.f32 %v1546_v45, %v653_v38  ;;  %vm671_vm6 = vweird.f32 %v1546_v45 }
 0x12a   : > { %1547 = vrsqrt.f32 %v747_v46  ;;  %vm672_vm8 = vmor %vm670_vm7, %vm671_vm6  ;;  %vm754_vm9 = vweird.f32 %v747_v46 }
 0x12b   : > { %v666_v49 = vmul.f32 %v1546_v45, %v665_v48  ;;  %v663_v50 = vsel %vm662_vm5, %v1544_v37, %v659_v47 }
 0x12c   : > { %v674_v54 = vmul.f32 %v663_v50, %v640_v15 }
 0x12d   : > { %v667_v51 = vmul.f32 0.5, %v666_v49 }
 0x12e   : > { %v680_v61 = vmul.f32 %v1531_v55, %v674_v54 }
 0x12f   : > { %v668_v52 = vsub.f32 1.5, %v667_v51 }
 0x130   : > { %v1548_v53 = vpop.eup %1547  ;;  %v686_v2 = vadd.f32 %v1532_v62, %v680_v61 }
 0x131   : > { %v669_v56 = vmul.f32 %v1546_v45, %v668_v52  ;;  %v749_v57 = vmul.f32 %v1548_v53, %v747_v46  ;;  %vm755_vm10 = vweird.f32 %v1548_v53 }
 0x132   : > { %vm756_vm11 = vmor %vm754_vm9, %vm755_vm10 }
 0x133   : > { %v673_v58 = vsel %vm672_vm8, %v1546_v45, %v669_v56  ;;  %v750_v59 = vmul.f32 %v1548_v53, %v749_v57  ;;  %vm1243_vm8 = vcmask 523264  }
 0x134   : > { %v675_v60 = vmul.f32 %v673_v58, %v641_v22 }
 0x135   : > { %v751_v63 = vmul.f32 0.5, %v750_v59 }
 0x136   : > { %v681_v0 = vmul.f32 %v1531_v55, %v675_v60 }
 0x137   : > { %v752_v1 = vsub.f32 1.5, %v751_v63 }
 0x138   : > { %v687_v3 = vadd.f32 %v1532_v62, %v681_v0 }
 0x139   : > { %v753_v4 = vmul.f32 %v1548_v53, %v752_v1 }
 0x13a   : > { %v688_v5 = vpack.c.bf16 %v687_v3, %v686_v2 }
 0x13b   : > { %v757_v7 = vsel %vm756_vm11, %v1548_v53, %v753_v4 }
 0x13c   : > { %v758_v8 = vmul.f32 %v757_v7, %v1827_v24  ;;  %1379 = vmatmul.msk.bf16.vlgmr.msra.gmra.mxu0 %vm623_vm0, %v688_v5 }
 0x13e   : > { %v763_v10 = vmul.f32 %v1533_v6, %v758_v8 }
 0x140   : > { %v1862_v11 = vadd.f32 %v1534_v9, %v763_v10 }
 0x142   : > { %v769_v13 = vpack.c.bf16 %v1862_v11, %v1862_v11 }
 0x144   : > { %1388 = vmatmul.msk.bf16.vlgmr.msra.gmra.mxu1 %vm623_vm0, %v769_v13 }
 0x1b9   : > { %v717_v14 = vpop.f32.mrf.mxu0 }
 0x1ba   : > { %v722_v15 = vpack.c.bf16 %v717_v14, %v717_v14 }
 0x1bc   : > { %725 = vst.msk [vmem:[#allocation2] sm:$0xf] %vm724_vm12, %v722_v15 }
 0x1c1   : > { %v719_v16 = vpop.f32.mrf.mxu0  ;;  %v798_v17 = vpop.f32.mrf.mxu1 }
 0x1c2   : > { %v723_v18 = vpack.c.bf16 %v719_v16, %v719_v16  ;;  %v802_v24 = vpack.c.bf16 %v798_v17, %v798_v17 }
 0x1c3   : > { %v1391_v20 = vld [vmem:[#allocation2] sm:$0xf] }
 0x1c4   : > { %727 = vst.msk [vmem:[#allocation2 + $0x4] sm:$0x3] %vm726_vm13, %v723_v18  ;;  %v867_v25 = vunpack.c.l.b16 %v802_v24 }
 0x1c6   : > { %v868_v26 = vpack.c.b16 %v867_v25, %v867_v25 }
 0x1c9   : > { %v800_v19 = vpop.f32.mrf.mxu1 }
 0x1cb   : > { %v1454_v21 = vld [vmem:[#allocation2] sm:$0x30] }
 0x1cc   : > { %v1867_v22 = vor.u32 %v1454_v21, %v1391_v20 }
 0x1ce   : > { %843 = vrot.lane.b32.xlu2 %v1867_v22, %s1650_s22  ;;  %v815_v23 = vsel %vm810_vm14, %v1867_v22, 0  ;;  %s2044_s22 = sld [smem:[#allocation19_spill]] }
 0x1cf   : > { %824 = vmatpush.bf16.xpose.msra.mxu2 %v815_v23 }
 0x1d6   : > { %933 = vrot.lane.b32.xlu2 %v1867_v22, %s1651_s2  ;;  %1393 = vmatmul.msk.bf16.vlgmr.msra.gmra.mxu2 %vm810_vm14, %v802_v24 }
 0x1de   : > { %931 = vrot.lane.b32.xlu2 %v868_v26, %s1651_s2 }
 0x228   : > { %v844_v27 = vpop.permute.xlu2 %843 }
 0x229   : > { %v850_v28 = vsel %vm848_vm15, %v844_v27, 0 }
 0x22a   : > { %859 = vmatpush.bf16.msra.mxu3 %v850_v28 }
 0x230   : > { %v934_v29 = vpop.permute.xlu2 %933 }
 0x231   : > { %v939_v30 = vsel %vm810_vm14, %v934_v29, 0 }
 0x232   : > { %948 = vmatpush.bf16.xpose.msrb.mxu1 %v939_v30 }
 0x238   : > { %v932_v31 = vpop.permute.xlu2 %931 }
 0x239   : > { %1397 = vmatmul.msk.bf16.vlgmr.msrb.gmra.mxu1 %vm810_vm14, %v932_v31 }
 0x259   : > { %v826_v32 = vpop.f32.mrf.mxu2 }
 0x25a   : > { %v831_v33 = vsel %vm830_vm1, %v826_v32, -inf }
 0x25b   : > { %832 = vmax.xlane.f32.xlu0 %v831_v33 }
 0x261   : > { %v828_v34 = vpop.f32.mrf.mxu2 }
 0x26f   : > { %871 = vrot.lane.b32.xlu0 %v1867_v22, %s1652_s24 }
 0x277   : > { %995 = vrot.lane.b32.xlu0 %v1867_v22, %s1653_s26 }
 0x2b6   : > { %v950_v35 = vpop.f32.mrf.mxu1 }
 0x2b7   : > { %v954_v36 = vsel %vm830_vm1, %v950_v35, -inf }
 0x2b8   : > { %955 = vmax.xlane.f32.xlu2 %v954_v36 }
 0x2be   : > { %v952_v37 = vpop.f32.mrf.mxu1 }
 0x2ce   : > { %v833_v38 = vpop.xlane.xlu0 %832 }
 0x2cf   : > { %v834_v39 = vsub.f32 %v826_v32, %v833_v38 }
 0x2d0   : > { %904 = vrot.lane.b32.xlu2 %v1867_v22, %s1654_s1  ;;  %s601_s1 = sand.u32 1, %s1631_s28  }
 0x2d1   : > { %v835_v40 = vmul.f32 1.442695, %v834_v39 }
 0x2d3   : > { %1549 = vpow2.f32 %v835_v40  ;;  %v1456_v40 = vld [vmem:[%s2004_s8 + $0x8] sm:$0xff] }
 0x2d4   : > { %1086 = vmatpush.bf16.msra.mxu1 %v1456_v40 }
 0x2d9   : > { %v1550_v41 = vpop.eup %1549 }
 0x2da   : > { %v837_v42 = vsel %vm830_vm1, %v1550_v41, 0.0 }
 0x2db   : > { %838 = vadd.xlane.f32.xlu1 %v837_v42 }
 0x2e1   : > { %v872_v43 = vpop.permute.xlu0 %871 }
 0x2e2   : > { %v877_v44 = vsel %vm810_vm14, %v872_v43, 0 }
 0x2e3   : > { %886 = vmatpush.bf16.xpose.msrb.mxu3 %v877_v44 }
 0x2e9   : > { %v996_v51 = vpop.permute.xlu0 %995 }
 0x2ea   : > { %v1001_v53 = vsel %vm810_vm14, %v996_v51, 0 }
 0x2f4   : > { %869 = vrot.lane.b32.xlu1 %v868_v26, %s1652_s24 }
 0x2fc   : > { %993 = vrot.lane.b32.xlu1 %v868_v26, %s1653_s26 }
 0x32b   : > { %v956_v45 = vpop.xlane.xlu2 %955 }
 0x32c   : > { %v957_v60 = vsub.f32 %v950_v35, %v956_v45  ;;  %v1535_v45 = vld [vmem:[%s2005_s9] ss:$0 sm:$0xff] }
 0x32e   : > { %v958_v62 = vmul.f32 1.442695, %v957_v60 }
 0x333   : > { %v905_v46 = vpop.permute.xlu2 %904 }
 0x334   : > { %v910_v47 = vsel %vm848_vm15, %v905_v46, 0 }
 0x335   : > { %919 = vmatpush.bf16.msrb.mxu0 %v910_v47 }
 0x34e   : > { %v839_v48 = vpop.xlane.xlu1 %838 }
 0x34f   : > { %1551 = vrcp.f32 %v839_v48 }
 0x350   : > { %1553 = vpow2.f32 %v958_v62 }
 0x355   : > { %v1552_v49 = vpop.eup %1551 }
 0x356   : > { %v841_v50 = vmul.f32 %v1552_v49, %v1550_v41  ;;  %v1554_v1 = vpop.eup %1553  ;;  %v1455_v41 = vld [vmem:[%s2004_s8] sm:$0xff] }
 0x357   : > { %v960_v3 = vsel %vm830_vm1, %v1554_v1, 0.0  ;;  %1087 = vmatpush.bf16.msra.mxu1 %v1455_v41 }
 0x358   : > { %v842_v52 = vpack.c.bf16 %v841_v50, %v841_v50 }
 0x35a   : > { %1394 = vmatmul.msk.bf16.vlgmr.msra.gmra.mxu3 %vm830_vm1, %v842_v52 }
 0x35b   : > { %1010 = vmatpush.bf16.xpose.msra.mxu3 %v1001_v53 }
 0x366   : > { %v870_v54 = vpop.permute.xlu1 %869 }
 0x36a   : > { %1395 = vmatmul.msk.bf16.vlgmr.msrb.gmra.mxu3 %vm810_vm14, %v870_v54 }
 0x36e   : > { %v994_v55 = vpop.permute.xlu1 %993 }
 0x37a   : > { %1399 = vmatmul.msk.bf16.vlgmr.msra.gmra.mxu3 %vm810_vm14, %v994_v55 }
 0x3dd   : > { %v861_v56 = vpop.f32.mrf.mxu3 }
 0x3de   : > { %865 = vst.msk [vmem:[#allocation3] sm:$0xff] %vm810_vm14, %v861_v56  ;;  %v1458_v56 = vld [vmem:[%s2010_s14 + $0x8] sm:$0xff] }
 0x3e5   : > { %v863_v57 = vpop.f32.mrf.mxu3 }
 0x3e6   : > { %v1457_v57 = vld [vmem:[%s2010_s14] sm:$0xff] }
 0x3ed   : > { %v888_v58 = vpop.f32.mrf.mxu3 }
 0x3ee   : > { %v892_v59 = vsel %vm830_vm1, %v888_v58, -inf }
 0x3ef   : > { %893 = vmax.xlane.f32.xlu0 %v892_v59 }
 0x3f5   : > { %v890_v61 = vpop.f32.mrf.mxu3 }
 0x3fd   : > { %v1012_v63 = vpop.f32.mrf.mxu3 }
 0x3fe   : > { %v1016_v0 = vsel %vm830_vm1, %v1012_v63, -inf }
 0x3ff   : > { %1017 = vmax.xlane.f32.xlu1 %v1016_v0 }
 0x405   : > { %v1014_v2 = vpop.f32.mrf.mxu3 }
 0x407   : > { %961 = vadd.xlane.f32.xlu1 %v960_v3 }
 0x420   : > { %966 = vrot.lane.b32.xlu1 %v1867_v22, %s1655_s20  ;;  %s1367_s20 = sshll.u32 %s601_s1, 3 }
 0x421   : > { %s603_s26 = scalar_lea.vmem [#allocation4], %s1367_s20  ;;  %s1589_s20 = scalar_lea.hbm %s2044_s22, 16 }
 0x422   : > { %s1276_s3 = sshll.u32 %s603_s26, 4  ;;  %s1277_s3 = int_to_ptr.vmem [resolvable:$true] %s1276_s3 }
 0x462   : > { %v894_v4 = vpop.xlane.xlu0 %893 }
 0x463   : > { %v895_v5 = vsub.f32 %v888_v58, %v894_v4  ;;  %v1459_v58 = vld [vmem:[%s2008_s12] sm:$0xff] }
 0x464   : > { %v1536_v4 = vld [vmem:[%s2006_s10] ss:$0 sm:$0xff] }
 0x465   : > { %v896_v6 = vmul.f32 1.442695, %v895_v5 }
 0x467   : > { %1555 = vpow2.f32 %v896_v6 }
 0x46d   : > { %v1556_v7 = vpop.eup %1555 }
 0x46e   : > { %v898_v8 = vsel %vm830_vm1, %v1556_v7, 0.0 }
 0x46f   : > { %899 = vadd.xlane.f32.xlu0 %v898_v8 }
 0x472   : > { %v1018_v9 = vpop.xlane.xlu1 %1017 }
 0x473   : > { %v1019_v10 = vsub.f32 %v1012_v63, %v1018_v9 }
 0x475   : > { %v1020_v13 = vmul.f32 1.442695, %v1019_v10  ;;  %v1464_v10 = vld [vmem:[%s2012_s16 + $0x18] sm:$0xff] }
 0x477   : > { %1557 = vpow2.f32 %v1020_v13  ;;  %v1463_v13 = vld [vmem:[%s2012_s16 + $0x10] sm:$0xff] }
 0x47a   : > { %v962_v16 = vpop.xlane.xlu1 %961 }
 0x47b   : > { %1559 = vrcp.f32 %v962_v16  ;;  %v1538_v16 = vld [vmem:[%s2011_s15] ss:$0 sm:$0xff] }
 0x47d   : > { %v1558_v14 = vpop.eup %1557 }
 0x47e   : > { %v1022_v15 = vsel %vm830_vm1, %v1558_v14, 0.0 }
 0x47f   : > { %1023 = vadd.xlane.f32.xlu0 %v1022_v15  ;;  %v1461_v15 = vld [vmem:[%s2012_s16] sm:$0xff] }
 0x481   : > { %v1560_v17 = vpop.eup %1559 }
 0x482   : > { %v964_v18 = vmul.f32 %v1560_v17, %v1554_v1 }
 0x484   : > { %v965_v21 = vpack.c.bf16 %v964_v18, %v964_v18 }
 0x492   : > { %v967_v19 = vpop.permute.xlu1 %966 }
 0x493   : > { %1028 = vrot.lane.b32.xlu0 %v1867_v22, %s1656_s23  ;;  %v972_v20 = vsel %vm848_vm15, %v967_v19, 0  ;;  %s1446_s23 = sshll.u32 %s1639_s30, 3  ;;  %s1263_s30 = scalar_lea.sflag [#allocation5], %s601_s1 }
 0x494   : > { %981 = vmatpush.bf16.msrb.mxu2 %v972_v20  ;;  %s1274_s24 = scalar_lea.hbm %s2044_s22, %s1446_s23 }
 0x495   : > { %s1278_s4 = sshll.u32 %s1274_s24, 4  ;;  %s1279_s4 = int_to_ptr.hbm [resolvable:$true] %s1278_s4 }
 0x496   : > { %s1583_s5 = sshra.s32 %s1279_s4, 4  ;;  %s1584_s5 = int_to_ptr.hbm [resolvable:$true] %s1583_s5 }
 0x497   : > { %1398 = vmatmul.msk.bf16.vlgmr.msrb.gmra.mxu2 %vm830_vm1, %v965_v21  ;;  %p1590_p1 = scmp.lt.s32.totalorder %s1584_s5, %s2044_s22 }
 0x498   : > { %1156 = vmatpush.bf16.msra.mxu2 %v1458_v56 }
 0x49c   : > { %1157 = vmatpush.bf16.msra.mxu2 %v1457_v57 }
 0x4e2   : > { %v900_v23 = vpop.xlane.xlu0 %899 }
 0x4e3   : > { %1561 = vrcp.f32 %v900_v23 }
 0x4e9   : > { %v1562_v24 = vpop.eup %1561 }
 0x4ea   : > { %v902_v25 = vmul.f32 %v1562_v24, %v1556_v7 }
 0x4ec   : > { %v903_v26 = vpack.c.bf16 %v902_v25, %v902_v25 }
 0x4ee   : > { %1396 = vmatmul.msk.bf16.vlgmr.msrb.gmra.mxu0 %vm830_vm1, %v903_v26 }
 0x4f2   : > { %v1024_v27 = vpop.xlane.xlu0 %1023 }
 0x4f3   : > { %1563 = vrcp.f32 %v1024_v27 }
 0x4f9   : > { %v1564_v28 = vpop.eup %1563 }
 0x4fa   : > { %v1026_v29 = vmul.f32 %v1564_v28, %v1558_v14  ;;  %v1462_v14 = vld [vmem:[%s2012_s16 + $0x8] sm:$0xff]  ;;  %v1539_v28 = vld [vmem:[%s2009_s13] ss:$0 sm:$0xff] }
 0x4fc   : > { %v1027_v31 = vpack.c.bf16 %v1026_v29, %v1026_v29 }
 0x505   : > { %v1029_v30 = vpop.permute.xlu0 %1028 }
 0x506   : > { %v1034_v22 = vsel %vm848_vm15, %v1029_v30, 0 }
 0x507   : > { %1043 = vmatpush.bf16.msra.mxu0 %v1034_v22 }
 0x50a   : > { %1400 = vmatmul.msk.bf16.vlgmr.msra.gmra.mxu0 %vm830_vm1, %v1027_v31 }
 0x50b   : > { %1251 = vmatpush.bf16.msrb.mxu0 %v1464_v10 }
 0x50f   : > { %1252 = vmatpush.bf16.msrb.mxu0 %v1463_v13 }
 0x513   : > { %1253 = vmatpush.bf16.msrb.mxu0 %v1462_v14 }
 0x517   : > { %1254 = vmatpush.bf16.msrb.mxu0 %v1461_v15 }
 0x51a   : > { %v983_v32 = vpop.f32.mrf.mxu2 }
 0x522   : > { %v985_v33 = vpop.f32.mrf.mxu2 }
 0x56b   : > { %v921_v34 = vpop.f32.mrf.mxu0 }
 0x56c   : > { %926 = vrot.lane.b32.xlu2 %v921_v34, %s1657_s17  ;;  %s1585_s17 = scalar_lea.hbm %s1584_s5, 8 }
 0x56d   : > { %p1586_p12 = scmp.ne.s32.totalorder %s1584_s5, %s1585_s17  ;;  %p1591_p2 = scmp.lt.s32.totalorder %s1589_s20, %s1585_s17 }
 0x56f   : > { %p1587_p13 = pnand %p1586_p12, %p1795_p4  ;;  %p1592_p3 = por %p1591_p2, %p1590_p1 }
 0x571   : > { %p1588_p0 = pneg %p1587_p13 }
 0x573   : > { %v923_v35 = vpop.f32.mrf.mxu0  ;;  %p1593_p5 = pnand %p1592_p3, %p1588_p0 }
 0x574   : > { %988 = vrot.lane.b32.xlu2 %v983_v32, %s1658_s18 }
 0x587   : > { %v1045_v36 = vpop.f32.mrf.mxu0 }
 0x588   : > { %1050 = vrot.lane.b32.xlu0 %v1045_v36, %s1659_s27  ;;  %s2043_s27 = sld [smem:[#allocation18_spill]] }
 0x58e   : > { %v1540_v35 = vld [vmem:[%s2043_s27] ss:$0 sm:$0xff] }
 0x58f   : > { %v1047_v37 = vpop.f32.mrf.mxu0 }
 0x5c6   : > { %v927_v38 = vpop.permute.xlu2 %926 }
 0x5c7   : > { %930 = vst.msk [vmem:[#allocation3] sm:$0xff] %vm929_vm2, %v927_v38 }
 0x5ce   : > { %v989_v39 = vpop.permute.xlu2 %988 }
 0x5cf   : > { %992 = vst.msk [vmem:[#allocation3] sm:$0xff] %vm991_vm3, %v989_v39 }
 0x5fa   : > { %v1051_v42 = vpop.permute.xlu0 %1050 }
 0x5fb   : > { %1054 = vst.msk [vmem:[#allocation3] sm:$0xff] %vm1053_vm4, %v1051_v42 }
 0x602   : > { %v1055_v43 = vld [vmem:[#allocation3] sm:$0xff] }
 0x603   : > { %v1056_v44 = vpack.c.bf16 %v1055_v43, %v1055_v43 }
 0x605   : > { %1409 = vmatmul.msk.bf16.vlgmr.msra.gmra.mxu1 %vm623_vm0, %v1056_v44 }
 0x682   : > { %v1089_v46 = vpop.f32.mrf.mxu1 }
 0x683   : > { %v1090_v47 = vadd.f32 %v1535_v45, %v1089_v46 }
 0x685   : > { %v1093_v48 = vadd.f32 %v1090_v47, %v1862_v11  ;;  %v1460_v11 = vld [vmem:[%s2008_s12 + $0x8] sm:$0xff] }
 0x686   : > { %1189 = vmatpush.bf16.msrb.mxu3 %v1460_v11 }
 0x687   : > { %v1094_v49 = vsel %vm623_vm0, %v1093_v48, 0.0 }
 0x688   : > { %1095 = vadd.xlane.f32.xlu1 %v1094_v49 }
 0x68a   : > { %v1091_v50 = vpop.f32.mrf.mxu1  ;;  %1190 = vmatpush.bf16.msrb.mxu3 %v1459_v58 }
 0x6fb   : > { %v1096_v51 = vpop.xlane.xlu1 %1095 }
 0x6fc   : > { %v1097_v52 = vmul.f32 %v1096_v51, %v1821_v12 }
 0x6fe   : > { %v1098_v53 = vsub.f32 %v1093_v48, %v1097_v52 }
 0x700   : > { %v1099_v54 = vmul.f32 %v1098_v53, %v1098_v53 }
 0x702   : > { %v1100_v55 = vsel %vm623_vm0, %v1099_v54, 0.0 }
 0x703   : > { %1101 = vadd.xlane.f32.xlu2 %v1100_v55 }
 0x776   : > { %v1102_v59 = vpop.xlane.xlu2 %1101 }
 0x777   : > { %v1103_v60 = vmul.f32 %v1102_v59, %v1821_v12  ;;  %v1537_v12 = vld [vmem:[%s2007_s11] ss:$0 sm:$0xff] }
 0x779   : > { %v1104_v61 = vadd.f32 1e-05, %v1103_v60 }
 0x77b   : > { %1565 = vrsqrt.f32 %v1104_v61  ;;  %vm1111_vm6 = vweird.f32 %v1104_v61 }
 0x781   : > { %v1566_v62 = vpop.eup %1565 }
 0x782   : > { %v1106_v63 = vmul.f32 %v1566_v62, %v1104_v61  ;;  %vm1112_vm5 = vweird.f32 %v1566_v62 }
 0x783   : > { %vm1113_vm7 = vmor %vm1111_vm6, %vm1112_vm5 }
 0x784   : > { %v1107_v0 = vmul.f32 %v1566_v62, %v1106_v63 }
 0x786   : > { %v1108_v1 = vmul.f32 0.5, %v1107_v0 }
 0x788   : > { %v1109_v2 = vsub.f32 1.5, %v1108_v1 }
 0x78a   : > { %v1110_v3 = vmul.f32 %v1566_v62, %v1109_v2 }
 0x78c   : > { %v1114_v5 = vsel %vm1113_vm7, %v1566_v62, %v1110_v3 }
 0x78d   : > { %v1115_v6 = vmul.f32 %v1114_v5, %v1098_v53 }
 0x78f   : > { %v1120_v7 = vmul.f32 %v1536_v4, %v1115_v6 }
 0x791   : > { %v1125_v8 = vadd.f32 %v1537_v12, %v1120_v7 }
 0x793   : > { %v1126_v9 = vpack.c.bf16 %v1125_v8, %v1125_v8 }
 0x795   : > { %1418 = vmatmul.msk.bf16.vlgmr.msra.gmra.mxu2 %vm623_vm0, %v1126_v9  ;;  %1427 = vmatmul.msk.bf16.vlgmr.msrb.gmra.mxu3 %vm623_vm0, %v1126_v9 }
 0x818   : > { %v1159_v17 = vpop.f32.mrf.mxu2  ;;  %v1192_v18 = vpop.f32.mrf.mxu3 }
 0x819   : > { %v1160_v19 = vadd.f32 %v1538_v16, %v1159_v17  ;;  %v1193_v31 = vadd.f32 %v1539_v28, %v1192_v18 }
 0x81b   : > { %v1197_v20 = vmul.f32 %v1160_v19, %v1160_v19  ;;  %v1196_v30 = vmul.f32 0.5, %v1160_v19 }
 0x81d   : > { %v1198_v21 = vmul.f32 %v1197_v20, %v1160_v19 }
 0x81f   : > { %v1199_v23 = vmul.f32 0.044715, %v1198_v21 }
 0x820   : > { %v1161_v24 = vpop.f32.mrf.mxu2  ;;  %v1194_v25 = vpop.f32.mrf.mxu3 }
 0x821   : > { %v1200_v26 = vadd.f32 %v1199_v23, %v1160_v19 }
 0x823   : > { %v1201_v27 = vmul.f32 0.7978846, %v1200_v26 }
 0x825   : > { %1567 = vtanh.f32 %v1201_v27 }
 0x82b   : > { %v1568_v29 = vpop.eup %1567 }
 0x82c   : > { %v1203_v22 = vadd.f32 1.0, %v1568_v29 }
 0x82e   : > { %v1204_v32 = vmul.f32 %v1203_v22, %v1196_v30 }
 0x830   : > { %v1205_v33 = vmul.f32 %v1204_v32, %v1193_v31 }
 0x832   : > { %v1206_v34 = vpack.c.bf16 %v1205_v33, %v1205_v33 }
 0x834   : > { %1444 = vmatmul.msk.bf16.vlgmr.msrb.gmra.mxu0 %vm1243_vm8, %v1206_v34 }
 0x8b1   : > { %v1256_v36 = vpop.f32.mrf.mxu0 }
 0x8b2   : > { %v1257_v37 = vadd.f32 %v1540_v35, %v1256_v36 }
 0x8b4   : > { %v1260_v38 = vadd.f32 %v1257_v37, %v1125_v8 }
 0x8b6   : > { %1261 = vst.msk [vmem:[%s603_s26] sm:$0xff] %vm623_vm0, %v1260_v38 }
 0x8b7   : > { %1596 = shalt.err (!%p1593_p5)
}
 0x8b8   : > { %1465 = dma.vmem_to_hbm [thread:$0]  (%p1795_p4), %s1277_s3, 128, %s1279_s4, %s1263_s30  }
 0x8b9   : > { %v1258_v39 = vpop.f32.mrf.mxu0 }
 0x8ba PF: > { %s2046_s1 = sld [smem:[#allocation7_spill]]  ;;  %p1471_p6 = scmp.ge.s32.totalorder %s1647_s19, 2 }
 0x8bc   : > { %p1468_p7 = pnand %p1471_p6, %p1802_p8 }
 0x8be   : > { %p1469_p9 = pneg %p1468_p7 }
 0x8c0   : > { %s1290_s24 = sand.u32 1, %s2046_s1  }
 0x8c1   : > { %s1291_s26 = scalar_lea.sflag [#allocation5], %s1290_s24 }
 0x8c2   : > { %1622 = dma.done.wait (%p1469_p9), %s1291_s26, 128  }
 0x8c3   : > { %1624 = vsyncadd (%p1469_p9), %s1291_s26, 4294967168  ;;  %s31_s19 = sadd.s32 1, %s1647_s19   ;;  %s2048_s30 = sld [smem:[#allocation8_spill]] }
 0x8c4   : > { %p28_p10 = scmp.ge.s32.totalorder %s31_s19, 4   ;;  %s2049_s0 = sld [smem:[#allocation9_spill]] }
 0x8c5   : > { %s2050_s27 = smov %s1631_s28  ;;  %s2051_s28 = smov %s1635_s29 }
 0x8c6   : > { %s2052_s29 = smov %s1808_s25  ;;  %30 = sbr.rel (!%p28_p10) target bundleno = 13 (0xd), region = 134 }
 0x8cb   :  { %1297 = vsyncpa [#allocation5], 1 }
 0x8cc   :  { %1299 = vsyncpa [#allocation5 + $0x1], 1 }

</bundles_post_ra>
